<compile_context>
chip_gen: v5e
topology: v5e:2x2
jax: 0.10.0
libtpu: 0.0.40
codegen_flags: <defaults>
</compile_context>

<pallas_src>
import functools

import jax
import jax.numpy as jnp
from jax.experimental import pallas as pl
from jax.experimental.pallas import tpu as pltpu


def _round_up(x, m):
    return ((x + m - 1) // m) * m


def _lorenz_kernel(eps2_ref, w_ref, x_ref, loss_ref, sum_acc, cnt_acc, *, C):
    # eps2_ref : SMEM (1, 1) f32     -- eps ** 2
    # w_ref    : VMEM (C, 1) f32     -- per-channel weights
    # x_ref    : VMEM (1, C, THW)    -- one batch / one spatial tile of x
    # loss_ref : SMEM (1, 1) f32     -- scalar output
    # sum_acc  : VMEM (C, THW) f32   -- per-channel partial sums
    # cnt_acc  : VMEM (C, THW) f32   -- non-NaN element counts
    b = pl.program_id(0)
    j = pl.program_id(1)
    is_first = jnp.logical_and(b == 0, j == 0)
    is_last = jnp.logical_and(b == pl.num_programs(0) - 1,
                              j == pl.num_programs(1) - 1)

    @pl.when(is_first)
    def _():
        sum_acc[...] = jnp.zeros_like(sum_acc)
        cnt_acc[...] = jnp.zeros_like(cnt_acc)

    eps2 = eps2_ref[0, 0]
    x = x_ref[0].astype(jnp.float32)                # (C, THW), lane-dense
    y = jnp.log(1.0 + eps2 * (x * x))               # EUP log + VPU muls
    y = jnp.where(jnp.isnan(y), 0.0, y)             # torch.nansum semantics
    sum_acc[...] += y                               # pure VPU accumulation
    cnt_acc[...] += (x == x).astype(jnp.float32)    # count non-NaN of x

    @pl.when(is_last)
    def _():
        chan = jnp.sum(sum_acc[...], axis=1, keepdims=True)   # (C, 1) XLU reduce
        term = chan * w_ref[...]                               # (C, 1)
        term = jnp.where(jnp.isnan(term), 0.0, term)           # nansum(loss * w)
        total = jnp.sum(term)
        cnt = jnp.sum(cnt_acc[...])
        denom = cnt / jnp.float32(C)
        loss_ref[0, 0] = total / denom


def weighted_lorenz_norm(x, w, eps, *, max_lane_tile=2048):
    """Pallas TPU implementation of Model_WeightedLorenzNorm.forward(x, w, eps)."""
    B, C, H, W = x.shape
    HW = H * W

    # Lane tile along the flattened spatial axis: multiple of 128, capped.
    THW = min(_round_up(HW, 128), max_lane_tile)
    HWp = _round_up(HW, THW)

    x3 = x.reshape(B, C, HW)
    if HWp != HW:
        # NaN padding is self-masking (0 contribution, not counted).
        x3 = jnp.pad(x3, ((0, 0), (0, 0), (0, HWp - HW)),
                     constant_values=jnp.nan)

    eps2 = (jnp.asarray(eps, jnp.float32) ** 2).reshape(1, 1)
    w_col = jnp.broadcast_to(jnp.asarray(w, jnp.float32).reshape(-1),
                             (C,)).reshape(C, 1)

    kernel = functools.partial(_lorenz_kernel, C=C)

    loss = pl.pallas_call(
        kernel,
        out_shape=jax.ShapeDtypeStruct((1, 1), jnp.float32),
        grid_spec=pltpu.PrefetchScalarGridSpec(
            num_scalar_prefetch=0,
            grid=(B, HWp // THW),
            in_specs=[
                pl.BlockSpec(memory_space=pltpu.MemorySpace.SMEM),    # eps^2
                pl.BlockSpec((C, 1), lambda b, j: (0, 0)),            # w
                pl.BlockSpec((1, C, THW), lambda b, j: (b, 0, j)),    # x tile
            ],
            out_specs=pl.BlockSpec(memory_space=pltpu.MemorySpace.SMEM),
            scratch_shapes=[
                pltpu.VMEM((C, THW), jnp.float32),   # per-channel sums
                pltpu.VMEM((C, THW), jnp.float32),   # non-NaN counts
            ],
        ),
        compiler_params=pltpu.CompilerParams(
            dimension_semantics=("arbitrary", "arbitrary")),
    )(eps2, w_col, x3)

    return loss[0, 0]


def _reference(x, w, eps):
    """Pure-JAX mirror of the PyTorch module (for validation)."""
    xf = x.astype(jnp.float32)
    y = jnp.log(1.0 + eps ** 2 * xf ** 2)
    l = jnp.nansum(y, axis=3)
    l = jnp.nansum(l, axis=2)
    l = jnp.nansum(l, axis=0)
    l = jnp.nansum(l * jnp.asarray(w, jnp.float32))
    denom = jnp.sum(~jnp.isnan(x)) / x.shape[1]
    return l / denom


if __name__ == "__main__":
    B, C, H, W = 2, 4, 16, 16
    key = jax.random.PRNGKey(0)
    k_x, k_nan, k_w, k_x2 = jax.random.split(key, 4)

    x = jax.random.normal(k_x, (B, C, H, W), dtype=jnp.float32)
    nan_mask = jax.random.uniform(k_nan, (B, C, H, W)) < 0.1
    x_nan = jnp.where(nan_mask, jnp.nan, x)

    w = jax.random.uniform(k_w, (C,), minval=0.1, maxval=1.0, dtype=jnp.float32)
    eps = 0.73

    # With NaNs (exercises nansum + count).
    out = weighted_lorenz_norm(x_nan, w, eps)
    jax.block_until_ready(out)
    ref = _reference(x_nan, w, eps)
    assert bool(jnp.isfinite(out)), "non-finite loss"
    assert jnp.allclose(out, ref, rtol=1e-4, atol=1e-6), (out, ref)

    # NaN-free path.
    out2 = weighted_lorenz_norm(x, w, eps)
    jax.block_until_ready(out2)
    ref2 = _reference(x, w, eps)
    assert jnp.allclose(out2, ref2, rtol=1e-4, atol=1e-6), (out2, ref2)

    # Odd spatial size (exercises the NaN lane-padding path).
    x_odd = jax.random.normal(k_x2, (B, C, 15, 15), dtype=jnp.float32)
    out3 = weighted_lorenz_norm(x_odd, w, eps)
    jax.block_until_ready(out3)
    ref3 = _reference(x_odd, w, eps)
    assert jnp.allclose(out3, ref3, rtol=1e-4, atol=1e-6), (out3, ref3)

    print("KERNEL_OK")
</pallas_src>

<mosaic_0001>
module attributes {stable_mosaic.version = 11 : i64} {
  func.func @_lorenz_kernel(%arg0: i32, %arg1: i32, %arg2: memref<1x1xf32, #tpu.memory_space<smem>>, %arg3: memref<4x1xf32, #tpu.memory_space<vmem>>, %arg4: memref<1x4x256xf32, #tpu.memory_space<vmem>>, %arg5: memref<1x1xf32, #tpu.memory_space<smem>>, %arg6: memref<4x256xf32, #tpu.memory_space<vmem>>, %arg7: memref<4x256xf32, #tpu.memory_space<vmem>>) attributes {dimension_semantics = [#tpu.dimension_semantics<arbitrary>, #tpu.dimension_semantics<arbitrary>], iteration_bounds = array<i64: 2, 1>, scalar_prefetch = 0 : i64, scratch_operands = 2 : i64, tpu.core_type = #tpu.core_type<tc>, window_params = [{transform_indices = @transform_0, window_bounds = array<i64: 1, 1>}, {pipeline_mode = #tpu.pipeline_mode<synchronous>, transform_indices = @transform_1, window_bounds = array<i64: 4, 1>}, {transform_indices = @transform_2, window_bounds = array<i64: 1, 4, 256>}, {transform_indices = @transform_3, window_bounds = array<i64: 1, 1>}]} {
    %c0_i32 = arith.constant 0 : i32
    %0 = arith.cmpi eq, %arg0, %c0_i32 : i32
    %c0_i32_0 = arith.constant 0 : i32
    %1 = arith.cmpi eq, %arg1, %c0_i32_0 : i32
    %2 = arith.andi %0, %1 : i1
    %c1_i32 = arith.constant 1 : i32
    %3 = arith.cmpi eq, %arg0, %c1_i32 : i32
    %c0_i32_1 = arith.constant 0 : i32
    %4 = arith.cmpi eq, %arg1, %c0_i32_1 : i32
    %5 = arith.andi %3, %4 : i1
    %6 = arith.extui %2 : i1 to i32
    %c0_i32_2 = arith.constant 0 : i32
    %7 = arith.cmpi ne, %6, %c0_i32_2 : i32
    scf.if %7 {
      %cst_17 = arith.constant 0.000000e+00 : f32
      %31 = vector.broadcast %cst_17 : f32 to vector<4x256xf32>
      %c0_18 = arith.constant 0 : index
      %c0_19 = arith.constant 0 : index
      %32 = vector.load %arg6[%c0_18, %c0_19] : memref<4x256xf32, #tpu.memory_space<vmem>>, vector<4x256xf32>
      tpu.vector_store %arg6[%c0_18, %c0_19], %31 {strides = array<i32>} : memref<4x256xf32, #tpu.memory_space<vmem>>, vector<4x256xf32>,
      %cst_20 = arith.constant 0.000000e+00 : f32
      %33 = vector.broadcast %cst_20 : f32 to vector<4x256xf32>
      %c0_21 = arith.constant 0 : index
      %c0_22 = arith.constant 0 : index
      %34 = vector.load %arg7[%c0_21, %c0_22] : memref<4x256xf32, #tpu.memory_space<vmem>>, vector<4x256xf32>
      tpu.vector_store %arg7[%c0_21, %c0_22], %33 {strides = array<i32>} : memref<4x256xf32, #tpu.memory_space<vmem>>, vector<4x256xf32>,
    } else {
    }
    %c0 = arith.constant 0 : index
    %c0_3 = arith.constant 0 : index
    %8 = memref.load %arg2[%c0, %c0_3] : memref<1x1xf32, #tpu.memory_space<smem>>
    %c0_4 = arith.constant 0 : index
    %c0_5 = arith.constant 0 : index
    %c0_6 = arith.constant 0 : index
    %9 = vector.load %arg4[%c0_4, %c0_5, %c0_6] : memref<1x4x256xf32, #tpu.memory_space<vmem>>, vector<1x4x256xf32>
    %10 = vector.shape_cast %9 : vector<1x4x256xf32> to vector<4x256xf32>
    %11 = arith.mulf %10, %10 : vector<4x256xf32>
    %12 = vector.broadcast %8 : f32 to vector<4x256xf32>
    %13 = arith.mulf %12, %11 : vector<4x256xf32>
    %cst = arith.constant 1.000000e+00 : f32
    %14 = vector.broadcast %cst : f32 to vector<4x256xf32>
    %15 = arith.addf %14, %13 : vector<4x256xf32>
    %16 = math.log %15 : vector<4x256xf32>
    %17 = arith.cmpf one, %16, %16 : vector<4x256xf32>
    %cst_7 = arith.constant 0.000000e+00 : f32
    %18 = vector.broadcast %cst_7 : f32 to vector<4x256xf32>
    %19 = arith.select %17, %18, %16 : vector<4x256xi1>, vector<4x256xf32>
    %c0_8 = arith.constant 0 : index
    %c0_9 = arith.constant 0 : index
    %20 = vector.load %arg6[%c0_8, %c0_9] : memref<4x256xf32, #tpu.memory_space<vmem>>, vector<4x256xf32>
    %21 = arith.addf %20, %19 : vector<4x256xf32>
    %c0_10 = arith.constant 0 : index
    %c0_11 = arith.constant 0 : index
    %22 = vector.load %arg6[%c0_10, %c0_11] : memref<4x256xf32, #tpu.memory_space<vmem>>, vector<4x256xf32>
    tpu.vector_store %arg6[%c0_10, %c0_11], %21 {strides = array<i32>} : memref<4x256xf32, #tpu.memory_space<vmem>>, vector<4x256xf32>,
    %c0_12 = arith.constant 0 : index
    %c0_13 = arith.constant 0 : index
    %23 = vector.load %arg7[%c0_12, %c0_13] : memref<4x256xf32, #tpu.memory_space<vmem>>, vector<4x256xf32>
    %24 = arith.cmpf oeq, %10, %10 : vector<4x256xf32>
    %25 = arith.extui %24 : vector<4x256xi1> to vector<4x256xi32>
    %26 = arith.sitofp %25 : vector<4x256xi32> to vector<4x256xf32>
    %27 = arith.addf %23, %26 : vector<4x256xf32>
    %c0_14 = arith.constant 0 : index
    %c0_15 = arith.constant 0 : index
    %28 = vector.load %arg7[%c0_14, %c0_15] : memref<4x256xf32, #tpu.memory_space<vmem>>, vector<4x256xf32>
    tpu.vector_store %arg7[%c0_14, %c0_15], %27 {strides = array<i32>} : memref<4x256xf32, #tpu.memory_space<vmem>>, vector<4x256xf32>,
    %29 = arith.extui %5 : i1 to i32
    %c0_i32_16 = arith.constant 0 : i32
    %30 = arith.cmpi ne, %29, %c0_i32_16 : i32
    scf.if %30 {
      %c0_17 = arith.constant 0 : index
      %c0_18 = arith.constant 0 : index
      %31 = vector.load %arg6[%c0_17, %c0_18] : memref<4x256xf32, #tpu.memory_space<vmem>>, vector<4x256xf32>
      %cst_19 = arith.constant dense<0.000000e+00> : vector<4xf32>
      %32 = vector.multi_reduction <add>, %31, %cst_19 [1] : vector<4x256xf32> to vector<4xf32>
      %33 = vector.shape_cast %32 : vector<4xf32> to vector<4x1xf32>
      %c0_20 = arith.constant 0 : index
      %c0_21 = arith.constant 0 : index
      %34 = vector.load %arg3[%c0_20, %c0_21] : memref<4x1xf32, #tpu.memory_space<vmem>>, vector<4x1xf32>
      %35 = arith.mulf %33, %34 : vector<4x1xf32>
      %36 = arith.cmpf one, %35, %35 : vector<4x1xf32>
      %cst_22 = arith.constant 0.000000e+00 : f32
      %37 = vector.broadcast %cst_22 : f32 to vector<4x1xf32>
      %38 = arith.select %36, %37, %35 : vector<4x1xi1>, vector<4x1xf32>
      %39 = vector.shape_cast %38 : vector<4x1xf32> to vector<1x4x1xf32>
      %cst_23 = arith.constant dense<0.000000e+00> : vector<1xf32>
      %40 = vector.multi_reduction <add>, %39, %cst_23 [1, 2] : vector<1x4x1xf32> to vector<1xf32>
      %41 = vector.shape_cast %40 : vector<1xf32> to vector<1x1x1xf32>
      %42 = vector.extract %41[0, 0, 0] : f32 from vector<1x1x1xf32>
      %c0_24 = arith.constant 0 : index
      %c0_25 = arith.constant 0 : index
      %43 = vector.load %arg7[%c0_24, %c0_25] : memref<4x256xf32, #tpu.memory_space<vmem>>, vector<4x256xf32>
      %44 = vector.shape_cast %43 : vector<4x256xf32> to vector<1x4x256xf32>
      %cst_26 = arith.constant dense<0.000000e+00> : vector<1xf32>
      %45 = vector.multi_reduction <add>, %44, %cst_26 [1, 2] : vector<1x4x256xf32> to vector<1xf32>
      %46 = vector.shape_cast %45 : vector<1xf32> to vector<1x1x1xf32>
      %47 = vector.extract %46[0, 0, 0] : f32 from vector<1x1x1xf32>
      %cst_27 = arith.constant 4.000000e+00 : f32
      %48 = arith.divf %47, %cst_27 : f32
      %49 = arith.divf %42, %48 : f32
      %c0_28 = arith.constant 0 : index
      %c0_29 = arith.constant 0 : index
      %50 = memref.load %arg5[%c0_28, %c0_29] : memref<1x1xf32, #tpu.memory_space<smem>>
      memref.store %49, %arg5[%c0_28, %c0_29] : memref<1x1xf32, #tpu.memory_space<smem>>
    } else {
    }
    return
  }
  func.func @transform_0(%arg0: i32, %arg1: i32) -> (i32, i32) {
    %c0_i32 = arith.constant 0 : i32
    %c0_i32_0 = arith.constant 0 : i32
    %c0_i32_1 = arith.constant 0 : i32
    return %c0_i32, %c0_i32_0 : i32, i32
  }
  func.func @transform_1(%arg0: i32, %arg1: i32) -> (i32, i32) {
    %c0_i32 = arith.constant 0 : i32
    %c0_i32_0 = arith.constant 0 : i32
    %c0_i32_1 = arith.constant 0 : i32
    return %c0_i32, %c0_i32_0 : i32, i32
  }
  func.func @transform_2(%arg0: i32, %arg1: i32) -> (i32, i32, i32) {
    %c0_i32 = arith.constant 0 : i32
    %c0_i32_0 = arith.constant 0 : i32
    return %arg0, %c0_i32, %arg1 : i32, i32, i32
  }
  func.func @transform_3(%arg0: i32, %arg1: i32) -> (i32, i32) {
    %c0_i32 = arith.constant 0 : i32
    %c0_i32_0 = arith.constant 0 : i32
    %c0_i32_1 = arith.constant 0 : i32
    return %c0_i32, %c0_i32_0 : i32, i32
  }
}

</mosaic_0001>

<bundles_post_ra>
// kernel: tpu_custom_call.1
= control target key start
LH: loop header
LB: loop body
LE: loop exit
PB: predicated region body
PF: predicated region fallthrough
CT: control target
= control target key end

     0   :  { %s693_s0 = inlined_call_operand.<no memory space> [shape: f32[1,1], index: 0, kind: input, shape index: {}]   ;;  %s694_s1 = inlined_call_operand.vmem [shape: f32[4,1], index: 1, kind: input, shape index: {}]   ;;  %s695_s2 = inlined_call_operand.hbm [shape: f32[2,4,256], index: 2, kind: input, shape index: {}]   ;;  %s696_s3 = inlined_call_operand.hbm [shape: f32[1,1], index: 3, kind: output, shape index: {}]  }
   0x1   :  { %8 = sst [smem:[#allocation4]] %s693_s0 }
   0x2   :  { %9 = vsyncpa [#allocation6], 0 }
   0x3   :  { %11 = vsyncpa [#allocation6 + $0x1], 0 }
   0x4   :  { %12 = vsyncpa [#allocation7], 0  ;;  %s596_s14 = smov 0   ;;  %s598_s15 = smov 0  }
   0x5   :  { %s600_s16 = smov 0   ;;  %s602_s17 = smov 0  }
   0x6   :  { %s604_s18 = smov 0   ;;  %s606_s19 = smov 0  }
   0x7 LB: > { %s372_s0 = sadd.s32 4294967295, %s567_s19   ;;  %s30_s20 = sadd.s32 1, %s563_s18  ;;  %s567_s19 = sphi %s606_s19, %s18_s19   ;;  %s563_s18 = sphi %s604_s18, %s703_s18   ;;  %s559_s17 = sphi %s602_s17, %s702_s17   ;;  %s555_s16 = sphi %s600_s16, %s701_s16   ;;  %s551_s15 = sphi %s598_s15, %s700_s15   ;;  %s547_s14 = sphi %s596_s14, %s699_s14  }
   0x8   : > { %p32_p0 = scmp.ge.s32.totalorder %s30_s20, 2  ;;  %s81_s21 = sadd.s32 1, %s555_s16 }
   0x9   : > { %p88_p1 = scmp.ne.s32.totalorder %s555_s16, %s551_s15  ;;  %p89_p2 = scmp.eq.s32.totalorder %s567_s19, 0 }
   0xa   : > { %s705_s20 = smov (%p32_p0, %s30_s20), 0  ;;  %p94_p4 = scmp.ne.s32.totalorder %s551_s15, %s547_s14 }
   0xb   : > { %p632_p3 = por %p89_p2, %p88_p1  ;;  %s76_s23 = ssub.s32 %s563_s18, %s705_s20 }
   0xc   : > { %p95_p5 = scmp.eq.s32.totalorder %s372_s0, 0  ;;  %p79_p6 = scmp.eq.s32.totalorder %s76_s23, 0 }
   0xd   : > { %p408_p8 = scmp.lt.s32.totalorder %s567_s19, 2  ;;  %s145_s26 = sand.u32 1, %s555_s16  }
   0xe   : > { %p641_p7 = por %p95_p5, %p94_p4  ;;  %s387_s27 = sshll.u32 %s563_s18, 3 }
   0xf   : > { %s647_s25 = scalar_select %p79_p6, %s555_s16, %s81_s21  }
  0x10   : > { %s375_s28 = sshll.u32 %s145_s26, 3  ;;  %s156_s4 = scalar_lea.hbm %s695_s2, %s387_s27 }
  0x11   : > { %s158_s5 = sshll.u32 %s156_s4, 4  ;;  %s149_s6 = scalar_lea.vmem [#allocation5], %s375_s28  ;;  %s159_s5 = int_to_ptr.hbm [resolvable:$true] %s158_s5 }
  0x12   : > { %s160_s7 = sshll.u32 %s149_s6, 4  ;;  %p405_p9 = pnand %p408_p8, %p632_p3  ;;  %s161_s7 = int_to_ptr.vmem [resolvable:$true] %s160_s7 }
  0x13   : > { %p378_p10 = scmp.ge.s32.totalorder %s567_s19, 1  ;;  %p165_p11 = scmp.lt.s32.totalorder %s567_s19, 3 }
  0x14   : > { %s146_s8 = scalar_lea.sflag [#allocation6], %s145_s26 }
  0x15   : > { %407 = dma.hbm_to_vmem [thread:$0]  (!%p405_p9), %s159_s5, 128, %s161_s7, %s146_s8  }
  0x16   : > { %p166_p12 = pnand %p378_p10, %p165_p11 }
  0x17   : > { %s171_s9 = sand.u32 (!%p166_p12), 1, %s551_s15  }
  0x18   : > { %169 = sbr.rel (%p166_p12) target bundleno = 460 (0x1cc), region = 32  ;;  %s379_s10 = sshll.u32 (!%p166_p12), %s171_s9, 3 }
  0x19   : > { %s172_s11 = scalar_lea.sflag (!%p166_p12), [#allocation6], %s171_s9  ;;  %s175_s12 = scalar_lea.vmem (!%p166_p12), [#allocation5], %s379_s10 }
  0x1d   : > { %538 = dma.done.wait (%p641_p7), %s172_s11, 128  }
  0x1e   : > { %540 = vsyncadd (%p641_p7), %s172_s11, 4294967168  ;;  %p195_p13 = scmp.eq.s32.totalorder %s559_s17, 0  ;;  %p199_p0 = scmp.eq.s32.totalorder %s559_s17, 1 }
  0x1f   : > { %v569_v0 = vmov (%p195_p13), 0.0  }
  0x20   : > { %203 = sbr.rel (!%p195_p13) target bundleno = 37 (0x25), region = 40  ;;  %204 = vst [vmem:[#allocation2] sm:$0xff] (%p195_p13), %v569_v0 }
  0x21   : > { %205 = vst [vmem:[#allocation3] sm:$0xff] (%p195_p13), %v569_v0 }
  0x25 PF: > { %s206_s13 = sld [smem:[#allocation4]]  ;;  %v207_v1 = vld [vmem:[%s175_s12] sm:$0xff]  ;;  %v570_v3 = vmov 0.0   ;;  %vm234_vm2 = vcmask (%p199_p0), 1043456   ;;  %vm244_vm3 = vcmask (%p199_p0), 3072   ;;  %v571_v32 = vmov (%p199_p0), 4.0  }
  0x26   : > { %vm220_vm0 = vcmp.eq.f32.partialorder %v207_v1, %v207_v1  ;;  %v208_v5 = vmul.f32 %v207_v1, %v207_v1  ;;  %v240_v27 = vld [vmem:[%s694_s1] sm:$0xf] (%p199_p0) }
  0x27   : > { %v382_v4 = vsel %vm220_vm0, 1.0, %v570_v3  ;;  %v216_v12 = vld [vmem:[#allocation2] sm:$0xff] }
  0x28   : > { %v219_v2 = vld [vmem:[#allocation3] sm:$0xff] }
  0x29   : > { %v223_v6 = vadd.f32 %v382_v4, %v219_v2 }
  0x2b   : > { %224 = vst [vmem:[#allocation3] sm:$0xff] %v223_v6  ;;  %v209_v7 = vstv %s206_s13 }
  0x2c   : > { %v210_v8 = vmul.f32 %v209_v7, %v208_v5 }
  0x2e   : > { %v211_v9 = vadd.f32 1.0, %v210_v8 }
  0x30   : > { %463 = vlog2.f32 %v211_v9 }
  0x31   : > { %465 = vrcp.f32 (%p199_p0), %v571_v32 }
  0x32   : > { %v255_v16 = vld [vmem:[#allocation3] sm:$0xff] (%p199_p0) }
  0x36   : > { %v464_v10 = vpop.eup %463 }
  0x37   : > { %v213_v11 = vmul.f32 0.6931472, %v464_v10  ;;  %v466_v35 = vpop.eup (%p199_p0), %465 }
  0x38   : > { %v275_v37 = vmul.f32 (%p199_p0), 4.0, %v466_v35  ;;  %vm279_vm5 = vweird.f32 (%p199_p0), %v466_v35 }
  0x39   : > { %vm214_vm1 = vcmp.ne.f32.partialorder %v213_v11, %v213_v11  ;;  %226 = sbr.rel (!%p199_p0) target bundleno = 454 (0x1c6), region = 44 }
  0x3a   : > { %v215_v13 = vsel %vm214_vm1, 0.0, %v213_v11  ;;  %v276_v40 = vsub.f32 (%p199_p0), 1.0, %v275_v37 }
  0x3b   : > { %v217_v14 = vadd.f32 %v216_v12, %v215_v13 }
  0x3c   : > { %v277_v44 = vmul.f32 (%p199_p0), %v466_v35, %v276_v40 }
  0x3d   : > { %218 = vst [vmem:[#allocation2] sm:$0xff] %v217_v14 }
  0x3e   : > { %v278_v48 = vadd.f32 %v466_v35, %v277_v44 }
  0x40   : > { %v280_v52 = vsel %vm279_vm5, %v466_v35, %v278_v48 }
  0x44   : > { %v227_v15 = vld [vmem:[#allocation2] sm:$0xff] }
  0x45   : > { %229 = vst [vmem:[#allocation1] ss:$2 sm:$0xff] %v227_v15 }
  0x4c   : > { %v230_v17 = vld.sshfl [vmem:[#allocation1] sm:$0xff pattern:$0x75316420]  ;;  %v231_v18 = vld.sshfl [vmem:[#allocation1 + $0x8] sm:$0xff pattern:$0x75316420] }
  0x4d   : > { %v235_v19 = vsel %vm234_vm2, %v230_v17, 0.0  ;;  %v236_v20 = vsel %vm234_vm2, %v231_v18, 0.0  ;;  %257 = vst [vmem:[#allocation1] ss:$2 sm:$0xff] %v255_v16 }
  0x4e   : > { %v237_v21 = vadd.f32 %v236_v20, %v235_v19 }
  0x50   : > { %238 = vadd.xlane.f32.xlu0 %v237_v21 }
  0x54   : > { %v258_v22 = vld.sshfl [vmem:[#allocation1] sm:$0xff pattern:$0x75316420]  ;;  %v259_v23 = vld.sshfl [vmem:[#allocation1 + $0x8] sm:$0xff pattern:$0x75316420] }
  0x55   : > { %v262_v24 = vsel %vm234_vm2, %v258_v22, 0.0  ;;  %v263_v25 = vsel %vm234_vm2, %v259_v23, 0.0 }
  0x56   : > { %v264_v26 = vadd.f32 %v263_v25, %v262_v24 }
  0x58   : > { %265 = vadd.xlane.f32.xlu1 %v264_v26 }
  0xc3   : > { %v239_v28 = vpop.xlane.xlu0 %238 }
  0xc4   : > { %v241_v29 = vmul.f32 %v240_v27, %v239_v28 }
  0xc6   : > { %vm242_vm4 = vcmp.ne.f32.partialorder %v241_v29, %v241_v29 }
  0xc7   : > { %v243_v30 = vsel %vm242_vm4, 0.0, %v241_v29 }
  0xc8   : > { %v245_v31 = vsel %vm244_vm3, %v243_v30, 0.0 }
  0xc9   : > { %246 = vadd.xlane.f32.xlu0 %v245_v31 }
  0xcb   : > { %v266_v33 = vpop.xlane.xlu1 %265 }
  0xcc   : > { %v267_v34 = vrot.slane %v266_v33, 4 }
  0xce   : > { %v268_v36 = vadd.f32 %v267_v34, %v266_v33 }
  0xd0   : > { %v269_v38 = vrot.slane %v268_v36, 2 }
  0xd2   : > { %v270_v43 = vadd.f32 %v269_v38, %v268_v36 }
  0xd4   : > { %v271_v47 = vrot.slane %v270_v43, 1 }
  0xd6   : > { %v272_v51 = vadd.f32 %v271_v47, %v270_v43 }
 0x13c   : > { %v247_v39 = vpop.xlane.xlu0 %246 }
 0x13d   : > { %v248_v41 = vrot.slane %v247_v39, 4 }
 0x13f   : > { %v249_v42 = vadd.f32 %v248_v41, %v247_v39 }
 0x141   : > { %v250_v45 = vrot.slane %v249_v42, 2 }
 0x143   : > { %v251_v46 = vadd.f32 %v250_v45, %v249_v42 }
 0x145   : > { %v252_v49 = vrot.slane %v251_v46, 1 }
 0x147   : > { %v253_v50 = vadd.f32 %v252_v49, %v251_v46 }
 0x149   : > { %390 = vpush %v253_v50 }
 0x14a   : > { %392 = vpush %v272_v51 }
 0x14b   : > { %394 = vpush %v280_v52 }
 0x17a   : > { %s391_s21 = spop %390 }
 0x17b   : > { %s393_s22 = spop %392 }
 0x17c   : > { %s395_s23 = spop %394 }
 0x17d   : > { %s282_s24 = smul.f32 %s395_s23, %s393_s22 }
 0x17f   : > { %v283_v53 = vstv %s282_s24 }
 0x180   : > { %467 = vrcp.f32 %v283_v53  ;;  %v295_v57 = vand.u32 2147483648, %v283_v53  ;;  %v293_v59 = vand.u32 2147483647, %v283_v53  ;;  %vm289_vm7 = vweird.f32 %v283_v53 }
 0x182   : > { %v296_v61 = vor.u32 1.1754944e-38, %v295_v57  ;;  %vm294_vm9 = vcmp.eq.f32.partialorder %v293_v59, 8.507059e+37 }
 0x186   : > { %v468_v54 = vpop.eup %467 }
 0x187   : > { %v285_v55 = vmul.f32 %v468_v54, %v283_v53  ;;  %vm290_vm6 = vweird.f32 %v468_v54 }
 0x188   : > { %vm291_vm8 = vmor %vm289_vm7, %vm290_vm6 }
 0x189   : > { %v286_v56 = vsub.f32 1.0, %v285_v55 }
 0x18b   : > { %v287_v58 = vmul.f32 %v468_v54, %v286_v56 }
 0x18d   : > { %v288_v60 = vadd.f32 %v468_v54, %v287_v58 }
 0x18f   : > { %v292_v62 = vsel %vm291_vm8, %v468_v54, %v288_v60 }
 0x190   : > { %v297_v63 = vsel %vm294_vm9, %v296_v61, %v292_v62 }
 0x191   : > { %396 = vpush %v297_v63 }
 0x1c2   : > { %s397_s26 = spop %396 }
 0x1c3   : > { %s299_s27 = smul.f32 %s397_s26, %s391_s21 }
 0x1c5   : > { %301 = sst [smem:[#allocation8]] %s299_s27 }
 0x1c6 PF: > { %p409_p1 = scmp.eq.s32.totalorder %s372_s0, 1  ;;  %s308_s30 = sshll.u32 %s696_s3, 4  ;;  %s309_s30 = int_to_ptr.hbm [resolvable:$true] %s308_s30 }
 0x1c7   : > { %s572_s4 = smov [#allocation8]  }
 0x1c8   : > { %401 = dma.smem_to_hbm (%p409_p1), %s572_s4, 16, %s309_s30, [#allocation7]  }
 0x1c9   : > { %542 = dma.done.wait (%p409_p1), [#allocation7], 16  }
 0x1ca   : > { %544 = vsyncadd (%p409_p1), [#allocation7], 4294967280 }
 0x1cb   : > { %317 = sfence }
 0x1cc PF: > { %s18_s19 = sadd.s32 1, %s567_s19   ;;  %s699_s14 = smov %s551_s15 }
 0x1cd   : > { %p15_p2 = scmp.ge.s32.totalorder %s18_s19, 4   ;;  %s700_s15 = smov %s555_s16 }
 0x1ce   : > { %s701_s16 = smov %s647_s25  ;;  %s702_s17 = smov %s563_s18 }
 0x1cf   : > { %s703_s18 = smov %s705_s20  ;;  %17 = sbr.rel (!%p15_p2) target bundleno = 7 (0x7), region = 78 }
 0x1d4   :  { %323 = vsyncpa [#allocation6], 1 }
 0x1d5   :  { %325 = vsyncpa [#allocation6 + $0x1], 1 }
 0x1d6   :  { %326 = vsyncpa [#allocation7], 1 }
 0x1d7   :  { %328 = vsyncpa [#allocation7 + $0x1], 1 }

</bundles_post_ra>
